<compile_context>
chip_gen: v5e
topology: v5e:2x2
jax: 0.10.0
libtpu: 0.0.40
codegen_flags: <defaults>
</compile_context>

<pallas_src>
import functools

import jax
import jax.numpy as jnp
from jax.experimental import pallas as pl
from jax.experimental.pallas import tpu as pltpu


# ----------------------------------------------------------------------------
# Pallas kernel
# ----------------------------------------------------------------------------
def _dueling_kernel(nlayers, *refs):
    """refs = (x, [w_i, b_i]*nlayers, w_logits, b_logits, seg_mat, out).

    w_logits/b_logits already contain the folded dueling combine, so the head
    matmul produces the logits directly.  seg_mat is the [A*N, A*N]
    block-diagonal ones matrix used for per-action segment sums.
    out is lane-dense: [TB, A*N].
    """
    x_ref = refs[0]
    idx = 1

    # MLP trunk: (NoisyLinear -> ReLU) * nlayers
    h = x_ref[...]
    for _ in range(nlayers):
        w_ref = refs[idx]
        b_ref = refs[idx + 1]
        idx += 2
        h = jnp.dot(h.astype(w_ref.dtype), w_ref[...],
                    preferred_element_type=jnp.float32) + b_ref[...]
        h = jnp.maximum(h, 0.0)

    wl_ref = refs[idx]
    bl_ref = refs[idx + 1]
    seg_ref = refs[idx + 2]
    out_ref = refs[idx + 3]

    # Folded dueling head: single matmul -> logits [TB, A*N]
    logits = jnp.dot(h.astype(wl_ref.dtype), wl_ref[...],
                     preferred_element_type=jnp.float32) + bl_ref[...]

    # Slab-wide log-softmax over per-action atom segments:
    #   a single per-row shift is exact (shift-invariance), segment sums via
    #   one tiny block-diagonal MXU matmul.
    m = jnp.max(logits, axis=-1, keepdims=True)        # 1 XLU reduce
    z = logits - m
    ez = jnp.exp(z)                                    # EUP
    seg = jnp.dot(ez, seg_ref[...],
                  preferred_element_type=jnp.float32)  # MXU: per-segment sums
    out_ref[...] = z - jnp.log(seg)                    # EUP + VPU


# ----------------------------------------------------------------------------
# Deterministic NoisyLinear parameter construction (effective weights)
# ----------------------------------------------------------------------------
def _scaled_noise(key, n):
    x = jax.random.normal(key, (n,), dtype=jnp.float32)
    return jnp.sign(x) * jnp.sqrt(jnp.abs(x))


def _noisy_linear_params(key, in_f, out_f, std_init=0.5):
    k_wmu, k_bmu, k_ein, k_eout = jax.random.split(key, 4)
    mu_range = 1.0 / jnp.sqrt(jnp.float32(in_f))
    w_mu = jax.random.uniform(k_wmu, (in_f, out_f), jnp.float32,
                              -mu_range, mu_range)
    b_mu = jax.random.uniform(k_bmu, (out_f,), jnp.float32,
                              -mu_range, mu_range)
    w_sigma = std_init / jnp.sqrt(jnp.float32(in_f))
    b_sigma = std_init / jnp.sqrt(jnp.float32(in_f))
    eps_in = _scaled_noise(k_ein, in_f)
    eps_out = _scaled_noise(k_eout, out_f)
    w = w_mu + w_sigma * (eps_in[:, None] * eps_out[None, :])   # [in, out]
    b = b_mu + b_sigma * eps_out                                # [out]
    return w, b.reshape(1, out_f)


def make_params(key, obs_dim, acs_dim, nlayers, nunits, n_atoms, std_init=0.5):
    params = []
    in_size = obs_dim
    for _ in range(nlayers):
        key, sub = jax.random.split(key)
        params.extend(_noisy_linear_params(sub, in_size, nunits, std_init))
        in_size = nunits
    key, sub = jax.random.split(key)
    params.extend(_noisy_linear_params(sub, in_size, acs_dim * n_atoms, std_init))
    key, sub = jax.random.split(key)
    params.extend(_noisy_linear_params(sub, in_size, 1 * n_atoms, std_init))
    return params  # [w1,b1,...,wL,bL, w_adv,b_adv, w_val,b_val]


# ----------------------------------------------------------------------------
# Wrapper
# ----------------------------------------------------------------------------
def _round_up(a, m):
    return ((a + m - 1) // m) * m


def disc_dist_noisy_dueling_q(x, params, *, nlayers, acs_dim, n_atoms,
                              block_b=1024, compute_dtype=jnp.float32):
    B, obs_dim = x.shape
    A, N = acs_dim, n_atoms
    out_width = A * N

    trunk = list(params[:2 * nlayers])
    w_adv, b_adv, w_val, b_val = params[2 * nlayers:2 * nlayers + 4]
    feat_dim = w_adv.shape[0]

    # --- Fold the (purely linear) dueling combine into the head parameters.
    #     logits = h @ w_logits + b_logits  is exactly
    #     val + (adv - mean_a adv)  computed on the head outputs.
    w_adv3 = w_adv.reshape(feat_dim, A, N)
    w_val3 = w_val.reshape(feat_dim, 1, N)
    w_logits = (w_val3 + (w_adv3 - jnp.mean(w_adv3, axis=1, keepdims=True))
                ).reshape(feat_dim, out_width)
    b_adv3 = b_adv.reshape(1, A, N)
    b_val3 = b_val.reshape(1, 1, N)
    b_logits = (b_val3 + (b_adv3 - jnp.mean(b_adv3, axis=1, keepdims=True))
                ).reshape(1, out_width)

    # Block-diagonal ones matrix for slab-wide per-action segment sums.
    seg_mat = jnp.kron(jnp.eye(A, dtype=jnp.float32),
                       jnp.ones((N, N), dtype=jnp.float32))     # [A*N, A*N]

    # Optional bf16 matmul path (main lever on v6e/v7x once nunits grows);
    # biases / softmax epilogue / seg_mat stay f32.
    x_in = x.astype(compute_dtype)
    trunk_c = [p.astype(compute_dtype) if i % 2 == 0 else p
               for i, p in enumerate(trunk)]
    w_logits_c = w_logits.astype(compute_dtype)

    # --- Batch tiling.  Big tiles amortize the ~0.35us/grid-step pipeline
    #     overhead (mem/overhead-bound regime); keep >= 2 grid steps whenever
    #     the batch allows so both v7x TensorCores get work ("parallel" axis).
    b8 = _round_up(max(B, 1), 8)
    TB = min(block_b, b8)
    if b8 // TB < 2 and b8 >= 16:
        TB = _round_up(pl.cdiv(b8, 2), 8)
    B_pad = _round_up(B, TB)
    if B_pad != B:
        x_in = jnp.pad(x_in, ((0, B_pad - B), (0, 0)))

    weight_like = trunk_c + [w_logits_c, b_logits, seg_mat]
    flat_inputs = [x_in] + weight_like

    in_specs = [pl.BlockSpec((TB, obs_dim), lambda i: (i, 0))]
    for p in weight_like:
        # Full-array blocks, same block every step -> VMEM-resident weights.
        # NOTE: double-buffered by default; if f32 weights grow past ~16 MiB
        # (nunits ~2048 on v7x's 64 MiB VMEM), switch to a K-tiled
        # "arbitrary" grid axis with an accumulator instead.
        in_specs.append(pl.BlockSpec(p.shape, lambda i: (0, 0)))

    out_spec = pl.BlockSpec((TB, out_width), lambda i: (i, 0))

    # Advisory cost estimate for XLA's scheduler.
    flops = 0
    k = obs_dim
    for l in range(nlayers):
        n = trunk[2 * l].shape[1]
        flops += 2 * B_pad * k * n
        k = n
    flops += 2 * B_pad * k * out_width            # folded head matmul
    flops += 2 * B_pad * out_width * out_width    # segment-sum matmul
    transcendentals = 2 * B_pad * out_width       # exp + log in log-softmax
    bytes_accessed = int(
        x_in.size * x_in.dtype.itemsize
        + sum(int(p.size) * p.dtype.itemsize for p in weight_like)  # resident: once
        + B_pad * out_width * 4)

    kernel = functools.partial(_dueling_kernel, nlayers)
    out = pl.pallas_call(
        kernel,
        out_shape=jax.ShapeDtypeStruct((B_pad, out_width), jnp.float32),
        grid=(B_pad // TB,),
        in_specs=in_specs,
        out_specs=out_spec,
        compiler_params=pltpu.CompilerParams(
            dimension_semantics=("parallel",)),
        cost_estimate=pl.CostEstimate(
            flops=flops,
            transcendentals=transcendentals,
            bytes_accessed=bytes_accessed),
    )(*flat_inputs)

    # Lane-dense slab -> PyTorch layout [B, acs_dim, n_atoms] (free reshape).
    return out[:B].reshape(B, A, N)


# ----------------------------------------------------------------------------
# Pure-JAX reference (for verification)
# ----------------------------------------------------------------------------
def _reference(x, params, *, nlayers, acs_dim, n_atoms):
    h = x
    idx = 0
    for _ in range(nlayers):
        w, b = params[idx], params[idx + 1]
        idx += 2
        h = jnp.maximum(h @ w + b, 0.0)
    w_adv, b_adv, w_val, b_val = params[idx:idx + 4]
    adv = (h @ w_adv + b_adv).reshape(-1, acs_dim, n_atoms)
    val = (h @ w_val + b_val).reshape(-1, 1, n_atoms)
    logits = val + (adv - adv.mean(axis=1, keepdims=True))
    return jax.nn.log_softmax(logits, axis=-1)


# ----------------------------------------------------------------------------
if __name__ == "__main__":
    obs_dim, acs_dim = 16, 4
    nlayers, nunits = 2, 32
    n_atoms, v_min, v_max = 8, -10.0, 10.0
    batch = 2

    key = jax.random.PRNGKey(0)
    k_params, k_x = jax.random.split(key)
    params = make_params(k_params, obs_dim, acs_dim, nlayers, nunits, n_atoms)
    x = jax.random.normal(k_x, (batch, obs_dim), dtype=jnp.float32)

    # (The `support` buffer of the module is not used in forward(); omitted.)
    log_probs = disc_dist_noisy_dueling_q(
        x, params, nlayers=nlayers, acs_dim=acs_dim, n_atoms=n_atoms
    )
    log_probs = jax.block_until_ready(log_probs)

    ref = _reference(x, params, nlayers=nlayers, acs_dim=acs_dim, n_atoms=n_atoms)
    assert log_probs.shape == (batch, acs_dim, n_atoms)
    assert jnp.allclose(log_probs, ref, atol=1e-5, rtol=1e-5)

    print("KERNEL_OK")
</pallas_src>

<mosaic_0001>
module attributes {stable_mosaic.version = 11 : i64} {
  func.func @_dueling_kernel(%arg0: i32, %arg1: memref<8x16xf32, #tpu.memory_space<vmem>>, %arg2: memref<16x32xf32, #tpu.memory_space<vmem>>, %arg3: memref<1x32xf32, #tpu.memory_space<vmem>>, %arg4: memref<32x32xf32, #tpu.memory_space<vmem>>, %arg5: memref<1x32xf32, #tpu.memory_space<vmem>>, %arg6: memref<32x32xf32, #tpu.memory_space<vmem>>, %arg7: memref<1x32xf32, #tpu.memory_space<vmem>>, %arg8: memref<32x32xf32, #tpu.memory_space<vmem>>, %arg9: memref<8x32xf32, #tpu.memory_space<vmem>>) attributes {dimension_semantics = [#tpu.dimension_semantics<parallel>], iteration_bounds = array<i64: 1>, scalar_prefetch = 0 : i64, scratch_operands = 0 : i64, tpu.core_type = #tpu.core_type<tc>, window_params = [{transform_indices = @transform_0, window_bounds = array<i64: 8, 16>}, {pipeline_mode = #tpu.pipeline_mode<synchronous>, transform_indices = @transform_1, window_bounds = array<i64: 16, 32>}, {pipeline_mode = #tpu.pipeline_mode<synchronous>, transform_indices = @transform_2, window_bounds = array<i64: 1, 32>}, {pipeline_mode = #tpu.pipeline_mode<synchronous>, transform_indices = @transform_3, window_bounds = array<i64: 32, 32>}, {pipeline_mode = #tpu.pipeline_mode<synchronous>, transform_indices = @transform_4, window_bounds = array<i64: 1, 32>}, {pipeline_mode = #tpu.pipeline_mode<synchronous>, transform_indices = @transform_5, window_bounds = array<i64: 32, 32>}, {pipeline_mode = #tpu.pipeline_mode<synchronous>, transform_indices = @transform_6, window_bounds = array<i64: 1, 32>}, {pipeline_mode = #tpu.pipeline_mode<synchronous>, transform_indices = @transform_7, window_bounds = array<i64: 32, 32>}, {transform_indices = @transform_8, window_bounds = array<i64: 8, 32>}]} {
    %c0 = arith.constant 0 : index
    %c0_0 = arith.constant 0 : index
    %0 = vector.load %arg1[%c0, %c0_0] : memref<8x16xf32, #tpu.memory_space<vmem>>, vector<8x16xf32>
    %c0_1 = arith.constant 0 : index
    %c0_2 = arith.constant 0 : index
    %1 = vector.load %arg2[%c0_1, %c0_2] : memref<16x32xf32, #tpu.memory_space<vmem>>, vector<16x32xf32>
    %cst = arith.constant dense<0.000000e+00> : vector<8x32xf32>
    %2 = tpu.matmul %0, %1, %cst {dimension_numbers = #tpu.dot_dimension_numbers<[1], [0], [0], [1], [0, 0, 1, 1], [], []>} : vector<8x16xf32>, vector<16x32xf32>, vector<8x32xf32> -> vector<8x32xf32>
    %c0_3 = arith.constant 0 : index
    %c0_4 = arith.constant 0 : index
    %3 = vector.load %arg3[%c0_3, %c0_4] : memref<1x32xf32, #tpu.memory_space<vmem>>, vector<1x32xf32>
    %4 = vector.broadcast %3 : vector<1x32xf32> to vector<8x32xf32>
    %5 = arith.addf %2, %4 : vector<8x32xf32>
    %cst_5 = arith.constant 0.000000e+00 : f32
    %6 = vector.broadcast %cst_5 : f32 to vector<8x32xf32>
    %7 = arith.maximumf %5, %6 : vector<8x32xf32>
    %c0_6 = arith.constant 0 : index
    %c0_7 = arith.constant 0 : index
    %8 = vector.load %arg4[%c0_6, %c0_7] : memref<32x32xf32, #tpu.memory_space<vmem>>, vector<32x32xf32>
    %cst_8 = arith.constant dense<0.000000e+00> : vector<8x32xf32>
    %9 = tpu.matmul %7, %8, %cst_8 {dimension_numbers = #tpu.dot_dimension_numbers<[1], [0], [0], [1], [0, 0, 1, 1], [], []>} : vector<8x32xf32>, vector<32x32xf32>, vector<8x32xf32> -> vector<8x32xf32>
    %c0_9 = arith.constant 0 : index
    %c0_10 = arith.constant 0 : index
    %10 = vector.load %arg5[%c0_9, %c0_10] : memref<1x32xf32, #tpu.memory_space<vmem>>, vector<1x32xf32>
    %11 = vector.broadcast %10 : vector<1x32xf32> to vector<8x32xf32>
    %12 = arith.addf %9, %11 : vector<8x32xf32>
    %cst_11 = arith.constant 0.000000e+00 : f32
    %13 = vector.broadcast %cst_11 : f32 to vector<8x32xf32>
    %14 = arith.maximumf %12, %13 : vector<8x32xf32>
    %c0_12 = arith.constant 0 : index
    %c0_13 = arith.constant 0 : index
    %15 = vector.load %arg6[%c0_12, %c0_13] : memref<32x32xf32, #tpu.memory_space<vmem>>, vector<32x32xf32>
    %cst_14 = arith.constant dense<0.000000e+00> : vector<8x32xf32>
    %16 = tpu.matmul %14, %15, %cst_14 {dimension_numbers = #tpu.dot_dimension_numbers<[1], [0], [0], [1], [0, 0, 1, 1], [], []>} : vector<8x32xf32>, vector<32x32xf32>, vector<8x32xf32> -> vector<8x32xf32>
    %c0_15 = arith.constant 0 : index
    %c0_16 = arith.constant 0 : index
    %17 = vector.load %arg7[%c0_15, %c0_16] : memref<1x32xf32, #tpu.memory_space<vmem>>, vector<1x32xf32>
    %18 = vector.broadcast %17 : vector<1x32xf32> to vector<8x32xf32>
    %19 = arith.addf %16, %18 : vector<8x32xf32>
    %cst_17 = arith.constant dense<0xFF800000> : vector<8xf32>
    %20 = vector.multi_reduction <maximumf>, %19, %cst_17 [1] : vector<8x32xf32> to vector<8xf32>
    %21 = vector.shape_cast %20 : vector<8xf32> to vector<8x1xf32>
    %22 = vector.broadcast %21 : vector<8x1xf32> to vector<8x32xf32>
    %23 = arith.subf %19, %22 : vector<8x32xf32>
    %24 = math.exp %23 : vector<8x32xf32>
    %c0_18 = arith.constant 0 : index
    %c0_19 = arith.constant 0 : index
    %25 = vector.load %arg8[%c0_18, %c0_19] : memref<32x32xf32, #tpu.memory_space<vmem>>, vector<32x32xf32>
    %cst_20 = arith.constant dense<0.000000e+00> : vector<8x32xf32>
    %26 = tpu.matmul %24, %25, %cst_20 {dimension_numbers = #tpu.dot_dimension_numbers<[1], [0], [0], [1], [0, 0, 1, 1], [], []>} : vector<8x32xf32>, vector<32x32xf32>, vector<8x32xf32> -> vector<8x32xf32>
    %27 = math.log %26 : vector<8x32xf32>
    %28 = arith.subf %23, %27 : vector<8x32xf32>
    %c0_21 = arith.constant 0 : index
    %c0_22 = arith.constant 0 : index
    %29 = vector.load %arg9[%c0_21, %c0_22] : memref<8x32xf32, #tpu.memory_space<vmem>>, vector<8x32xf32>
    tpu.vector_store %arg9[%c0_21, %c0_22], %28 {strides = array<i32>} : memref<8x32xf32, #tpu.memory_space<vmem>>, vector<8x32xf32>,
    return
  }
  func.func @transform_0(%arg0: i32) -> (i32, i32) {
    %c0_i32 = arith.constant 0 : i32
    %c0_i32_0 = arith.constant 0 : i32
    return %arg0, %c0_i32 : i32, i32
  }
  func.func @transform_1(%arg0: i32) -> (i32, i32) {
    %c0_i32 = arith.constant 0 : i32
    %c0_i32_0 = arith.constant 0 : i32
    %c0_i32_1 = arith.constant 0 : i32
    return %c0_i32, %c0_i32_0 : i32, i32
  }
  func.func @transform_2(%arg0: i32) -> (i32, i32) {
    %c0_i32 = arith.constant 0 : i32
    %c0_i32_0 = arith.constant 0 : i32
    %c0_i32_1 = arith.constant 0 : i32
    return %c0_i32, %c0_i32_0 : i32, i32
  }
  func.func @transform_3(%arg0: i32) -> (i32, i32) {
    %c0_i32 = arith.constant 0 : i32
    %c0_i32_0 = arith.constant 0 : i32
    %c0_i32_1 = arith.constant 0 : i32
    return %c0_i32, %c0_i32_0 : i32, i32
  }
  func.func @transform_4(%arg0: i32) -> (i32, i32) {
    %c0_i32 = arith.constant 0 : i32
    %c0_i32_0 = arith.constant 0 : i32
    %c0_i32_1 = arith.constant 0 : i32
    return %c0_i32, %c0_i32_0 : i32, i32
  }
  func.func @transform_5(%arg0: i32) -> (i32, i32) {
    %c0_i32 = arith.constant 0 : i32
    %c0_i32_0 = arith.constant 0 : i32
    %c0_i32_1 = arith.constant 0 : i32
    return %c0_i32, %c0_i32_0 : i32, i32
  }
  func.func @transform_6(%arg0: i32) -> (i32, i32) {
    %c0_i32 = arith.constant 0 : i32
    %c0_i32_0 = arith.constant 0 : i32
    %c0_i32_1 = arith.constant 0 : i32
    return %c0_i32, %c0_i32_0 : i32, i32
  }
  func.func @transform_7(%arg0: i32) -> (i32, i32) {
    %c0_i32 = arith.constant 0 : i32
    %c0_i32_0 = arith.constant 0 : i32
    %c0_i32_1 = arith.constant 0 : i32
    return %c0_i32, %c0_i32_0 : i32, i32
  }
  func.func @transform_8(%arg0: i32) -> (i32, i32) {
    %c0_i32 = arith.constant 0 : i32
    %c0_i32_0 = arith.constant 0 : i32
    return %arg0, %c0_i32 : i32, i32
  }
}

</mosaic_0001>

<bundles_post_ra>
// kernel: tpu_custom_call.1
= control target key start
LH: loop header
LB: loop body
LE: loop exit
PB: predicated region body
PF: predicated region fallthrough
CT: control target
= control target key end

     0   :  { %13 = vsyncpa [#allocation3], 0  ;;  %s514_s0 = inlined_call_operand.hbm [shape: f32[8,16], index: 0, kind: input, shape index: {}]   ;;  %s515_s1 = inlined_call_operand.hbm [shape: f32[16,32], index: 1, kind: input, shape index: {}]   ;;  %s516_s2 = inlined_call_operand.vmem [shape: f32[1,32], index: 2, kind: input, shape index: {}]   ;;  %s517_s3 = inlined_call_operand.hbm [shape: f32[32,32], index: 3, kind: input, shape index: {}]   ;;  %s518_s4 = inlined_call_operand.vmem [shape: f32[1,32], index: 4, kind: input, shape index: {}]   ;;  %s519_s5 = inlined_call_operand.hbm [shape: f32[32,32], index: 5, kind: input, shape index: {}]   ;;  %s520_s6 = inlined_call_operand.vmem [shape: f32[1,32], index: 6, kind: input, shape index: {}]   ;;  %s521_s7 = inlined_call_operand.hbm [shape: f32[32,32], index: 7, kind: input, shape index: {}]   ;;  %s522_s8 = inlined_call_operand.hbm [shape: f32[8,32], index: 8, kind: output, shape index: {}]  }
   0x1   :  { %14 = vsyncpa [#allocation6], 0 }
   0x2   :  { %15 = vsyncpa [#allocation9], 0  ;;  %s32_s29 = sshll.u32 %s515_s1, 4  ;;  %s33_s29 = int_to_ptr.hbm [resolvable:$true] %s32_s29 }
   0x3   :  { %16 = vsyncpa [#allocation4], 0  ;;  %s429_s30 = smov [#allocation5]   ;;  %s62_s12 = sshll.u32 %s519_s5, 4  ;;  %s63_s12 = int_to_ptr.hbm [resolvable:$true] %s62_s12 }
   0x4   :  { %s34_s9 = sshll.u32 %s429_s30, 4  ;;  %s430_s13 = smov 128   ;;  %s35_s9 = int_to_ptr.vmem [resolvable:$true] %s34_s9 }
   0x5   :  { %s431_s14 = smov 8   ;;  %s432_s15 = smov [#allocation8]  }
   0x6   :  { %40 = dma.hbm_to_vmem [thread:$0]  %s33_s29, 256, %s35_s9, [#allocation6], %s430_s13, %s430_s13, %s431_s14  }
   0x7   :  { %s64_s16 = sshll.u32 %s432_s15, 4  ;;  %s22_s19 = sshll.u32 %s514_s0, 4  ;;  %s65_s16 = int_to_ptr.vmem [resolvable:$true] %s64_s16  ;;  %s23_s19 = int_to_ptr.hbm [resolvable:$true] %s22_s19 }
   0x8   :  { %70 = dma.hbm_to_vmem [thread:$0]  %s63_s12, 512, %s65_s16, [#allocation9], %s430_s13, %s430_s13, %s431_s14  }
   0x9   :  { %s47_s21 = sshll.u32 %s517_s3, 4  ;;  %s433_s22 = smov [#allocation2]   ;;  %s48_s21 = int_to_ptr.hbm [resolvable:$true] %s47_s21 }
   0xa   :  { %s24_s23 = sshll.u32 %s433_s22, 4  ;;  %s434_s5 = smov [#allocation7]   ;;  %s25_s23 = int_to_ptr.vmem [resolvable:$true] %s24_s23 }
   0xb   :  { %27 = dma.hbm_to_vmem [thread:$0]  %s23_s19, 128, %s25_s23, [#allocation3]  }
   0xc   :  { %s49_s24 = sshll.u32 %s434_s5, 4  ;;  %s77_s27 = sshll.u32 %s521_s7, 4  ;;  %s50_s24 = int_to_ptr.vmem [resolvable:$true] %s49_s24  ;;  %s78_s27 = int_to_ptr.hbm [resolvable:$true] %s77_s27 }
   0xd   :  { %55 = dma.hbm_to_vmem [thread:$0]  %s48_s21, 512, %s50_s24, [#allocation6], %s430_s13, %s430_s13, %s431_s14  }
   0xe   :  { %s435_s0 = smov [#allocation10]  }
   0xf   :  { %s79_s28 = sshll.u32 %s435_s0, 4  ;;  %s80_s28 = int_to_ptr.vmem [resolvable:$true] %s79_s28 }
  0x10   :  { %85 = dma.hbm_to_vmem [thread:$0]  %s78_s27, 512, %s80_s28, [#allocation9], %s430_s13, %s430_s13, %s431_s14  }
  0x11   :  { %421 = dma.done.wait [#allocation3], 128  }
  0x12   :  { %422 = vsyncadd [#allocation3], 4294967168 }
  0x13   :  { %423 = dma.done.wait [#allocation6], 768  }
  0x14   :  { %424 = vsyncadd [#allocation6], 4294966528 }
  0x15   :  { %425 = dma.done.wait [#allocation9], 1024  }
  0x16   :  { %426 = vsyncadd [#allocation9], 4294966272  ;;  %v108_v0 = vld [vmem:[#allocation5 + $0x8] sm:$0xff]  ;;  %v107_v1 = vld [vmem:[#allocation5] sm:$0xff]  ;;  %vm113_vm0 = vcmask 130048   ;;  %vm146_vm1 = vcmask 261120  }
  0x17   :  { %131 = vmatpush.msra.mxu0 %v108_v0  ;;  %v106_v2 = vld [vmem:[#allocation2] sm:$0xff]  ;;  %v141_v3 = vld [vmem:[#allocation7 + $0x18] sm:$0xff]  ;;  %v140_v4 = vld [vmem:[#allocation7 + $0x10] sm:$0xff]  ;;  %s246_s12 = sshll.u32 %s522_s8, 4  ;;  %s247_s12 = int_to_ptr.hbm [resolvable:$true] %s246_s12 }
  0x18   :  { %162 = vmatpush.msra.mxu1 %v141_v3  ;;  %v139_v5 = vld [vmem:[#allocation7 + $0x8] sm:$0xff]  ;;  %v138_v6 = vld [vmem:[#allocation7] sm:$0xff]  ;;  %v174_v7 = vld [vmem:[#allocation8 + $0x18] sm:$0xff] }
  0x19   :  { %132 = vmatpush.msra.mxu0 %v107_v1  ;;  %194 = vmatpush.msra.mxu2 %v174_v7  ;;  %v270_v8 = vld [vmem:[%s516_s2] ss:$0 sm:$0xff]  ;;  %v173_v12 = vld [vmem:[#allocation8 + $0x10] sm:$0xff]  ;;  %v171_v14 = vld [vmem:[#allocation8] sm:$0xff] }
  0x1a   :  { %258 = vmatmul.msk.f32.vlgmr.msra.gmra.mxu0 %vm113_vm0, %v106_v2  ;;  %163 = vmatpush.msra.mxu1 %v140_v4  ;;  %v172_v13 = vld [vmem:[#allocation8 + $0x8] sm:$0xff]  ;;  %v211_v23 = vld [vmem:[#allocation10 + $0x18] sm:$0xff]  ;;  %v210_v24 = vld [vmem:[#allocation10 + $0x10] sm:$0xff] }
  0x1b   :  { %195 = vmatpush.msra.mxu2 %v173_v12  ;;  %v271_v15 = vld [vmem:[%s518_s4] ss:$0 sm:$0xff]  ;;  %227 = vmatpush.msra.mxu3 %v211_v23  ;;  %v208_v26 = vld [vmem:[#allocation10] sm:$0xff]  ;;  %s436_s4 = smov [#allocation11]  }
  0x1c   :  { %164 = vmatpush.msra.mxu1 %v139_v5  ;;  %v272_v19 = vld [vmem:[%s520_s6] ss:$0 sm:$0xff]  ;;  %s244_s6 = sshll.u32 %s436_s4, 4  ;;  %s245_s6 = int_to_ptr.vmem [resolvable:$true] %s244_s6 }
  0x1d   :  { %196 = vmatpush.msra.mxu2 %v172_v13  ;;  %v209_v25 = vld [vmem:[#allocation10 + $0x8] sm:$0xff]  ;;  %228 = vmatpush.msra.mxu3 %v210_v24 }
  0x1e   :  { %165 = vmatpush.msra.mxu1 %v138_v6 }
  0x1f   :  { %197 = vmatpush.msra.mxu2 %v171_v14  ;;  %229 = vmatpush.msra.mxu3 %v209_v25 }
  0x21   :  { %230 = vmatpush.msra.mxu3 %v208_v26 }
  0x97   :  { %v134_v9 = vpop.f32.mrf.mxu0 }
  0x98   :  { %v135_v10 = vadd.f32 %v270_v8, %v134_v9 }
  0x9a   :  { %v137_v11 = vmax.f32 %v135_v10, 0.0 }
  0x9c   :  { %259 = vmatmul.msk.f32.vlgmr.msra.gmra.mxu1 %vm146_vm1, %v137_v11 }
 0x119   :  { %v167_v16 = vpop.f32.mrf.mxu1 }
 0x11a   :  { %v168_v17 = vadd.f32 %v271_v15, %v167_v16 }
 0x11c   :  { %v170_v18 = vmax.f32 %v168_v17, 0.0 }
 0x11e   :  { %260 = vmatmul.msk.f32.vlgmr.msra.gmra.mxu2 %vm146_vm1, %v170_v18 }
 0x1a1   :  { %v199_v20 = vpop.f32.mrf.mxu2 }
 0x1a2   :  { %v200_v21 = vadd.f32 %v272_v19, %v199_v20 }
 0x1a4   :  { %v202_v22 = vsel %vm146_vm1, %v200_v21, -inf }
 0x1a5   :  { %203 = vmax.xlane.f32.xlu0 %v202_v22 }
 0x218   :  { %v204_v27 = vpop.xlane.xlu0 %203 }
 0x219   :  { %v205_v28 = vsub.f32 %v200_v21, %v204_v27 }
 0x21b   :  { %v206_v29 = vmul.f32 1.442695, %v205_v28 }
 0x21d   :  { %273 = vpow2.f32 %v206_v29 }
 0x223   :  { %v274_v30 = vpop.eup %273 }
 0x224   :  { %261 = vmatmul.msk.f32.vlgmr.msra.gmra.mxu3 %vm146_vm1, %v274_v30 }
 0x2a7   :  { %v232_v31 = vpop.f32.mrf.mxu3 }
 0x2a8   :  { %275 = vlog2.f32 %v232_v31 }
 0x2ae   :  { %v276_v32 = vpop.eup %275 }
 0x2af   :  { %v236_v33 = vmul.f32 0.6931472, %v276_v32 }
 0x2b1   :  { %v237_v34 = vsub.f32 %v205_v28, %v236_v33 }
 0x2b3   :  { %238 = vst.msk [vmem:[#allocation11] sm:$0xff] %vm146_vm1, %v237_v34 }
 0x2b4   :  { %249 = dma.vmem_to_hbm [thread:$0]  %s245_s6, 128, %s247_s12, [#allocation4]  }
 0x2b5   :  { %427 = dma.done.wait [#allocation4], 128  }
 0x2b6   :  { %428 = vsyncadd [#allocation4], 4294967168 }
 0x2b7   :  { %254 = vsyncpa [#allocation3], 1 }
 0x2b8   :  { %255 = vsyncpa [#allocation6], 1 }
 0x2b9   :  { %256 = vsyncpa [#allocation9], 1 }
 0x2ba   :  { %257 = vsyncpa [#allocation4], 1 }

</bundles_post_ra>
